<compile_context>
chip_gen: v7x
topology: tpu7x:2x2x1
jax: 0.10.0
libtpu: 0.0.40
codegen_flags: <defaults>
</compile_context>

<pallas_src>
import math
import jax
import jax.numpy as jnp
from jax.experimental import pallas as pl
from jax.experimental.pallas import tpu as pltpu

_LANE = 128
_MAX_BLOCK_BYTES = 2 * 1024 * 1024      # per-tile target (x / pe / out each, double-buffered)
_VMEM_LIMIT_BYTES = 32 * 1024 * 1024    # safe on v5e / v6e / v7x


def _sublane_multiple(dtype) -> int:
    itemsize = jnp.dtype(dtype).itemsize
    return {4: 8, 2: 16, 1: 32}.get(itemsize, 8)


# ---------------------------------------------------------------------------
# Kernels
# ---------------------------------------------------------------------------

def _add_rows_kernel(x_ref, pe_ref, o_ref):
    # x_ref / o_ref: (TS, D) row tile of one batch element (batch dim squeezed)
    # pe_ref:        (TS, D) tile of the position table (resident across the
    #                inner batch grid axis -> fetched once per row tile)
    o_ref[...] = x_ref[...] + pe_ref[...]


def _add_flat_kernel(x_ref, pe_ref, o_ref):
    # x_ref / o_ref: (B, TC) lane-dense tile of the flattened (S*D) axis
    # pe_ref:        (1, TC) -> sublane-broadcast over the batch dim
    o_ref[...] = x_ref[...] + pe_ref[...]


# ---------------------------------------------------------------------------
# Tile-size selection
# ---------------------------------------------------------------------------

def _choose_seq_tile(S: int, D: int, itemsize: int, sub: int) -> int:
    """Largest multiple-of-`sub` divisor of S that fits the block-byte budget."""
    budget_rows = max(sub, (_MAX_BLOCK_BYTES // (D * itemsize)) // sub * sub)
    cap = min(512, budget_rows, S)
    ts = max(sub, (cap // sub) * sub)
    while ts > sub and S % ts != 0:
        ts -= sub
    return ts


def _choose_flat_tile(B: int, SD: int, itemsize: int) -> int:
    """Largest multiple-of-128 divisor of SD that fits the block-byte budget."""
    if SD % _LANE != 0:
        return SD  # must take the full lane extent (block == full array dim)
    budget = max(_LANE, (_MAX_BLOCK_BYTES // max(1, B * itemsize)) // _LANE * _LANE)
    tc = min(budget, SD)
    tc = max(_LANE, (tc // _LANE) * _LANE)
    while tc > _LANE and SD % tc != 0:
        tc -= _LANE
    return tc


# ---------------------------------------------------------------------------
# Wrapper
# ---------------------------------------------------------------------------

def absolute_position_encoding(x: jax.Array, pe_weight: jax.Array) -> jax.Array:
    """x: (B, S, D), pe_weight: (max_length, D). Returns x + pe_weight[:S]."""
    B, S, D = x.shape
    max_length, d_embed = pe_weight.shape
    if S > max_length:
        raise ValueError(
            f"Input sequence length {S} exceeds maximum position encoding "
            f"length {max_length}."
        )
    assert d_embed == D

    # keep the add a same-dtype VPU op (no per-element upcast/downcast)
    pe = pe_weight if pe_weight.dtype == x.dtype else pe_weight.astype(x.dtype)
    itemsize = jnp.dtype(x.dtype).itemsize
    sub = _sublane_multiple(x.dtype)
    cost = pl.CostEstimate(
        flops=B * S * D,
        transcendentals=0,
        bytes_accessed=(2 * B * S * D + S * D) * itemsize,
    )

    if D % _LANE == 0 and S % sub == 0:
        # ---- row-tiled path: lane-dense D, pe tile resident over batch ----
        TS = _choose_seq_tile(S, D, itemsize, sub)
        num_s = S // TS
        grid = (num_s, B)  # batch innermost -> pe block index constant across it
        return pl.pallas_call(
            _add_rows_kernel,
            out_shape=jax.ShapeDtypeStruct((B, S, D), x.dtype),
            grid_spec=pltpu.PrefetchScalarGridSpec(
                num_scalar_prefetch=0,
                grid=grid,
                in_specs=[
                    pl.BlockSpec((pl.Squeezed(), TS, D), lambda s, b: (b, s, 0)),
                    # full table passed; index_map only ever touches rows < S,
                    # so no wrapper-side pe_weight[:S] copy is materialized.
                    pl.BlockSpec((TS, D), lambda s, b: (s, 0)),
                ],
                out_specs=pl.BlockSpec((pl.Squeezed(), TS, D), lambda s, b: (b, s, 0)),
            ),
            compiler_params=pltpu.CompilerParams(
                dimension_semantics=("parallel", "parallel"),
                vmem_limit_bytes=_VMEM_LIMIT_BYTES,
            ),
            cost_estimate=cost,
        )(x, pe)

    # ---- fallback path: D not lane-aligned (e.g. D < 128) ----
    # Flatten (S, D) into one lane axis so stores are unmasked full vregs;
    # batch becomes the sublane dim and pe broadcasts over it.
    SD = S * D
    x2 = x.reshape(B, SD)
    # Wrapper-side slice+reshape is required here because D % 128 != 0 makes
    # per-row windowing of the full table lane-sparse; SD is tiny in this regime.
    pe2 = pe[:S].reshape(1, SD)
    TC = _choose_flat_tile(B, SD, itemsize)
    num_c = SD // TC if SD % TC == 0 else pl.cdiv(SD, TC)
    out2 = pl.pallas_call(
        _add_flat_kernel,
        out_shape=jax.ShapeDtypeStruct((B, SD), x.dtype),
        grid_spec=pltpu.PrefetchScalarGridSpec(
            num_scalar_prefetch=0,
            grid=(num_c,),
            in_specs=[
                pl.BlockSpec((B, TC), lambda c: (0, c)),
                pl.BlockSpec((1, TC), lambda c: (0, c)),
            ],
            out_specs=pl.BlockSpec((B, TC), lambda c: (0, c)),
        ),
        compiler_params=pltpu.CompilerParams(
            dimension_semantics=("parallel",),
            vmem_limit_bytes=_VMEM_LIMIT_BYTES,
        ),
        cost_estimate=cost,
    )(x2, pe2)
    return out2.reshape(B, S, D)


def init_pe_weight(key, max_length: int, d_embed: int, dtype=jnp.float32):
    # kaiming_normal_(mode='fan_in', nonlinearity='linear'):
    #   gain = 1, fan_in = d_embed  ->  std = 1 / sqrt(d_embed)
    std = 1.0 / math.sqrt(d_embed)
    return (jax.random.normal(key, (max_length, d_embed), dtype=jnp.float32) * std).astype(dtype)


if __name__ == "__main__":
    key = jax.random.PRNGKey(0)
    k1, k2, k3, k4 = jax.random.split(key, 4)

    # Case 1: small embedding (D=32 < 128) -> flattened lane-dense path
    B, S, D, max_length = 2, 8, 32, 16
    x = jax.random.normal(k1, (B, S, D), dtype=jnp.float32)
    pe_w = init_pe_weight(k2, max_length, D)
    out = jax.block_until_ready(absolute_position_encoding(x, pe_w))
    ref = x + pe_w[:S][None, :, :]
    assert out.shape == (B, S, D)
    assert jnp.allclose(out, ref, atol=1e-6), "mismatch vs reference (flat path)"

    # Case 2: lane-aligned embedding (D=128) -> row-tiled path with resident pe tile
    B2, S2, D2, max_length2 = 2, 16, 128, 32
    x2 = jax.random.normal(k3, (B2, S2, D2), dtype=jnp.float32)
    pe_w2 = init_pe_weight(k4, max_length2, D2)
    out2 = jax.block_until_ready(absolute_position_encoding(x2, pe_w2))
    ref2 = x2 + pe_w2[:S2][None, :, :]
    assert out2.shape == (B2, S2, D2)
    assert jnp.allclose(out2, ref2, atol=1e-6), "mismatch vs reference (row-tiled path)"

    print("KERNEL_OK")
</pallas_src>

<mosaic_0001>
module attributes {stable_mosaic.version = 11 : i64} {
  func.func @_add_flat_kernel(%arg0: i32, %arg1: memref<2x256xf32, #tpu.memory_space<vmem>>, %arg2: memref<1x256xf32, #tpu.memory_space<vmem>>, %arg3: memref<2x256xf32, #tpu.memory_space<vmem>>) attributes {dimension_semantics = [#tpu.dimension_semantics<parallel>], iteration_bounds = array<i64: 1>, scalar_prefetch = 0 : i64, scratch_operands = 0 : i64, tpu.core_type = #tpu.core_type<tc>, window_params = [{transform_indices = @transform_0, window_bounds = array<i64: 2, 256>}, {transform_indices = @transform_1, window_bounds = array<i64: 1, 256>}, {transform_indices = @transform_2, window_bounds = array<i64: 2, 256>}]} {
    %c0 = arith.constant 0 : index
    %c0_0 = arith.constant 0 : index
    %0 = vector.load %arg1[%c0, %c0_0] : memref<2x256xf32, #tpu.memory_space<vmem>>, vector<2x256xf32>
    %c0_1 = arith.constant 0 : index
    %c0_2 = arith.constant 0 : index
    %1 = vector.load %arg2[%c0_1, %c0_2] : memref<1x256xf32, #tpu.memory_space<vmem>>, vector<1x256xf32>
    %2 = vector.broadcast %1 : vector<1x256xf32> to vector<2x256xf32>
    %3 = arith.addf %0, %2 : vector<2x256xf32>
    %c0_3 = arith.constant 0 : index
    %c0_4 = arith.constant 0 : index
    %4 = vector.load %arg3[%c0_3, %c0_4] : memref<2x256xf32, #tpu.memory_space<vmem>>, vector<2x256xf32>
    tpu.vector_store %arg3[%c0_3, %c0_4], %3 {strides = array<i32>} : memref<2x256xf32, #tpu.memory_space<vmem>>, vector<2x256xf32>,
    return
  }
  func.func @transform_0(%arg0: i32) -> (i32, i32) {
    %c0_i32 = arith.constant 0 : i32
    %c0_i32_0 = arith.constant 0 : i32
    return %c0_i32, %arg0 : i32, i32
  }
  func.func @transform_1(%arg0: i32) -> (i32, i32) {
    %c0_i32 = arith.constant 0 : i32
    %c0_i32_0 = arith.constant 0 : i32
    return %c0_i32, %arg0 : i32, i32
  }
  func.func @transform_2(%arg0: i32) -> (i32, i32) {
    %c0_i32 = arith.constant 0 : i32
    %c0_i32_0 = arith.constant 0 : i32
    return %c0_i32, %arg0 : i32, i32
  }
}

</mosaic_0001>

<bundles_post_ra>
// kernel: tpu_custom_call.1
= control target key start
LH: loop header
LB: loop body
LE: loop exit
PB: predicated region body
PF: predicated region fallthrough
CT: control target
= control target key end

     0   :  { %7 = vsyncpa [#allocation3], 0  ;;  %s157_s0 = inlined_call_operand.hbm [shape: f32[2,256], index: 0, kind: input, shape index: {}]   ;;  %s158_s1 = inlined_call_operand.vmem [shape: f32[1,256], index: 1, kind: input, shape index: {}]   ;;  %s159_s2 = inlined_call_operand.hbm [shape: f32[2,256], index: 2, kind: output, shape index: {}]  }
   0x1   :  { %8 = vsyncpa [#allocation4], 0  ;;  %s112_s9 = smov [#allocation2]   ;;  %s64_s13 = scalar_lea.hbm %s157_s0, 64 }
   0x2   :  { %s15_s10 = sshll.u32 %s112_s9, 4  ;;  %p65_p0 = scmp.ne.s32.totalorder %s157_s0, %s64_s13  ;;  %s16_s10 = int_to_ptr.vmem [resolvable:$true] %s15_s10 }
   0x3   :  { %p68_p1 = scmp.lt.u32.totalorder %s64_s13, %s157_s0 }
   0x5   :  { %p70_p2 = pnand %p68_p1, %p65_p0 }
   0x7   :  { %73 = shalt.err (!%p70_p2)
}
   0x8   :  { %s74_s18 = scalar_lea.vmem %s16_s10, 64  ;;  %p79_p4 = scmp.lt.s32.totalorder %s16_s10, %s16_s10 }
   0x9   :  { %p75_p3 = scmp.ne.s32.totalorder %s16_s10, %s74_s18  ;;  %p80_p5 = scmp.lt.s32.totalorder %s74_s18, %s74_s18 }
   0xb   :  { %p81_p6 = por %p80_p5, %p79_p4 }
   0xd   :  { %p82_p7 = pnand %p81_p6, %p75_p3 }
   0xf   :  { %85 = shalt.err (!%p82_p7)
}
  0x10   :  { %18 = dma.hbm_to_vmem [thread:$0]  %s157_s0, 64, %s16_s10, [#allocation3]  }
  0x11   :  { %108 = dma.done.wait [#allocation3], 64  }
  0x12   :  { %109 = vsyncadd [#allocation3], 4294967232  ;;  %v27_v0 = vlaneseq  ;;  %v113_v1 = vmov 1983009808   ;;  %v25_v7 = vld [vmem:[%s158_s1] sm:$0x3] }
  0x13   :  { %v37_v2 = vunpack.c.l.s4 %v113_v1  ;;  %v24_v12 = vld [vmem:[#allocation2] sm:$0xf]  ;;  %s114_s23 = smov [#allocation5]  }
  0x14   :  { %v28_v3 = vshrl.u32 %v27_v0, 7  ;;  %s52_s0 = sshll.u32 %s114_s23, 4  ;;  %s53_s0 = int_to_ptr.vmem [resolvable:$true] %s52_s0 }
  0x15   :  { %v38_v6 = vunpack.c.0.s8 %v37_v2  ;;  %s86_s24 = scalar_lea.vmem %s53_s0, 64  ;;  %p91_p9 = scmp.lt.s32.totalorder %s53_s0, %s53_s0 }
  0x16   :  { %v29_v4 = vsub.s32 0, %v28_v3  ;;  %v33_v5 = vsub.s32 1, %v28_v3  ;;  %p87_p8 = scmp.ne.s32.totalorder %s53_s0, %s86_s24  ;;  %p92_p10 = scmp.lt.s32.totalorder %s86_s24, %s86_s24 }
  0x17   :  { %v41_v10 = vsub.s32 %v38_v6, %v28_v3 }
  0x18   :  { %v30_v8 = vrot.slane %v25_v7, %v29_v4  ;;  %v34_v9 = vrot.slane %v25_v7, %v33_v5  ;;  %p93_p11 = por %p92_p10, %p91_p9 }
  0x1a   :  { %v35_v11 = vcombine.low %v30_v8, %v34_v9  ;;  %p94_p12 = pnand %p93_p11, %p87_p8 }
  0x1c   :  { %v42_v13 = vrot.slane %v35_v11, %v41_v10 }
  0x1e   :  { %v44_v14 = vadd.f32 %v42_v13, %v24_v12 }
  0x20   :  { %45 = vst [vmem:[#allocation5] sm:$0xf] %v44_v14 }
  0x21   :  { %97 = shalt.err (!%p94_p12)
}
  0x22   :  { %s98_s26 = scalar_lea.hbm %s159_s2, 64 }
  0x23   :  { %p99_p13 = scmp.ne.s32.totalorder %s159_s2, %s98_s26  ;;  %p102_p0 = scmp.lt.u32.totalorder %s98_s26, %s159_s2 }
  0x25   :  { %p104_p1 = pnand %p102_p0, %p99_p13 }
  0x27   :  { %107 = shalt.err (!%p104_p1)
}
  0x28   :  { %55 = dma.vmem_to_hbm [thread:$0]  %s53_s0, 64, %s159_s2, [#allocation4]  }
  0x29   :  { %110 = dma.done.wait [#allocation4], 64  }
  0x2a   :  { %111 = vsyncadd [#allocation4], 4294967232 }
  0x2b   :  { %59 = vsyncpa [#allocation3], 1 }
  0x2c   :  { %60 = vsyncpa [#allocation4], 1 }

</bundles_post_ra>
